<compile_context>
chip_gen: v7x
topology: tpu7x:2x2x1
jax: 0.10.0
libtpu: 0.0.40
codegen_flags: <defaults>
</compile_context>

<pallas_src>
import functools
import math

import jax
import jax.numpy as jnp
from jax.experimental import pallas as pl
from jax.experimental.pallas import tpu as pltpu

# ---------------- synthetic config (small shapes implied by the module) ---------
BS, NC = 2, 2                    # batch, num choices
BC = BS * NC
SEQ_LM = 8                       # LM token count
SENT_DIM = 64                    # d_sentence (encoder hidden size)
D_MODEL = 128                    # args.transformer_dim
NHEAD = 4                        # args.num_heads
HEAD_DIM = D_MODEL // NHEAD
D_FFN = 256                      # args.transformer_ffn_dim
N_LAYERS = 2                     # k
N_NTYPE = 4
N_ETYPE = 8
N_NODES = 8                      # nodes per graph
VOCAB = 100
EDGE_COUNTS = [8, 6, 8, 5]       # edges per (bs*nc) graph  (ragged)
MAX_E = max(EDGE_COUNTS)
T_TOTAL = SEQ_LM + MAX_E
LN_EPS = 1e-5
INIT_STD = 0.02
NEG_INF = -1e9
EDGE_FEAT = N_ETYPE + 2 * N_NTYPE   # input to edge_encoder MLP


# ---------------------------- kernel helpers -------------------------------------
def _tanh_gelu(x):
    return 0.5 * x * (1.0 + jnp.tanh(0.7978845608028654 * (x + 0.044715 * x * x * x)))


def _layernorm(x, ln_params, eps):
    """x: (M, D) f32; ln_params: (2, D) = [gamma; beta]."""
    g = ln_params[0:1, :]
    b = ln_params[1:2, :]
    mu = jnp.mean(x, axis=-1, keepdims=True)
    xc = x - mu
    var = jnp.mean(xc * xc, axis=-1, keepdims=True)
    return xc * jax.lax.rsqrt(var + eps) * g + b


# ---------------------------- plain linear kernel (sent_encoder) -----------------
def _linear_kernel(x_ref, w_ref, b_ref, o_ref):
    x = x_ref[...].astype(jnp.float32)
    w = w_ref[...].astype(jnp.float32)
    y = jnp.dot(x, w, preferred_element_type=jnp.float32) + b_ref[...]
    o_ref[...] = y.astype(o_ref.dtype)


def pallas_linear(x, w, b):
    """y = x @ w + b.  x: (M, K), w: (K, N), b: (1, N)."""
    M, K = x.shape
    _, N = w.shape
    return pl.pallas_call(
        _linear_kernel,
        out_shape=jax.ShapeDtypeStruct((M, N), jnp.float32),
        grid=(1,),
        in_specs=[
            pl.BlockSpec((M, K), lambda i: (0, 0)),
            pl.BlockSpec((K, N), lambda i: (0, 0)),
            pl.BlockSpec((1, N), lambda i: (0, 0)),
        ],
        out_specs=pl.BlockSpec((M, N), lambda i: (0, 0)),
    )(x, w, b)


# ---------------------------- fused MLP (Linear -> LN+GELU -> Linear) ------------
def _mlp_ln_kernel(x_ref, w0_ref, b0_ref, ln_ref, w1_ref, b1_ref, o_ref, *, eps):
    x = x_ref[...].astype(jnp.float32)
    h = jnp.dot(x, w0_ref[...], preferred_element_type=jnp.float32) + b0_ref[...]
    h = _tanh_gelu(_layernorm(h, ln_ref[...], eps))
    y = jnp.dot(h, w1_ref[...], preferred_element_type=jnp.float32) + b1_ref[...]
    o_ref[...] = y.astype(o_ref.dtype)


def pallas_mlp_ln(x, w0, b0, ln, w1, b1):
    """edge_encoder style MLP: Linear -> (Dropout=id) -> LayerNorm -> GELU -> Linear."""
    M, K = x.shape
    H = w0.shape[1]
    N = w1.shape[1]
    return pl.pallas_call(
        functools.partial(_mlp_ln_kernel, eps=LN_EPS),
        out_shape=jax.ShapeDtypeStruct((M, N), jnp.float32),
        grid=(1,),
        in_specs=[
            pl.BlockSpec((M, K), lambda i: (0, 0)),
            pl.BlockSpec((K, H), lambda i: (0, 0)),
            pl.BlockSpec((1, H), lambda i: (0, 0)),
            pl.BlockSpec((2, H), lambda i: (0, 0)),
            pl.BlockSpec((H, N), lambda i: (0, 0)),
            pl.BlockSpec((1, N), lambda i: (0, 0)),
        ],
        out_specs=pl.BlockSpec((M, N), lambda i: (0, 0)),
    )(x, w0, b0, ln, w1, b1)


# ---------------------------- fused qa_scorer ------------------------------------
def _qa_scorer_kernel(x_ref, w0_ref, b0_ref, ln_ref, w1_ref, b1_ref, o_ref, *, eps):
    x = x_ref[...].astype(jnp.float32)                               # (BC, D)
    h = jnp.dot(x, w0_ref[...], preferred_element_type=jnp.float32) + b0_ref[...]
    h = _tanh_gelu(_layernorm(h, ln_ref[...], eps))
    # final (D -> 1) projection as a multiply + lane reduction (no 1-wide matmul)
    score = jnp.sum(h * w1_ref[...], axis=-1, keepdims=True) + b1_ref[...]
    o_ref[...] = score.astype(o_ref.dtype)


def pallas_qa_scorer(x, w0, b0, ln, w1_row, b1):
    M, D = x.shape
    return pl.pallas_call(
        functools.partial(_qa_scorer_kernel, eps=LN_EPS),
        out_shape=jax.ShapeDtypeStruct((M, 1), jnp.float32),
        grid=(1,),
        in_specs=[
            pl.BlockSpec((M, D), lambda i: (0, 0)),
            pl.BlockSpec((D, D), lambda i: (0, 0)),
            pl.BlockSpec((1, D), lambda i: (0, 0)),
            pl.BlockSpec((2, D), lambda i: (0, 0)),
            pl.BlockSpec((1, D), lambda i: (0, 0)),
            pl.BlockSpec((1, 1), lambda i: (0, 0)),
        ],
        out_specs=pl.BlockSpec((M, 1), lambda i: (0, 0)),
    )(x, w0, b0, ln, w1_row, b1)


# ---------------------------- fused transformer decoder layer --------------------
def _fused_layer_kernel(tgt_ref, te_ref, mask_ref,
                        ln1_ref, wqk_ref, bqk_ref, wv_ref, bv_ref, wo_ref, bo_ref,
                        ln2_ref, wf1_ref, bf1_ref, wf2_ref, bf2_ref,
                        o_ref, *, nhead, head_dim, scale, eps):
    x = tgt_ref[0].astype(jnp.float32)        # (T, D)
    te = te_ref[0].astype(jnp.float32)        # (T, D)
    add_mask = mask_ref[0]                    # (1, T) additive key-padding mask

    d_model = nhead * head_dim

    # ----- LN1, query/key input gets type embeddings, value does not -----
    tgt2 = _layernorm(x, ln1_ref[...], eps)   # (T, D)
    qv = tgt2 + te

    # ----- fused Q|K projection + separate V projection (value input differs) ----
    qk = jnp.dot(qv, wqk_ref[...], preferred_element_type=jnp.float32) + bqk_ref[...]
    v = jnp.dot(tgt2, wv_ref[...], preferred_element_type=jnp.float32) + bv_ref[...]

    # ----- all heads inside one kernel invocation -----
    outs = []
    for h in range(nhead):
        lo = h * head_dim
        hi = lo + head_dim
        qh = qk[:, lo:hi]
        kh = qk[:, d_model + lo:d_model + hi]
        vh = v[:, lo:hi]
        s = jnp.dot(qh, kh.T, preferred_element_type=jnp.float32) * scale + add_mask
        s_max = jnp.max(s, axis=-1, keepdims=True)
        p = jnp.exp(s - s_max)
        denom = jnp.sum(p, axis=-1, keepdims=True)
        inv = pl.reciprocal(denom, approx=True)
        outs.append(jnp.dot(p, vh, preferred_element_type=jnp.float32) * inv)
    attn = jnp.concatenate(outs, axis=-1)     # (T, D)
    attn = jnp.dot(attn, wo_ref[...], preferred_element_type=jnp.float32) + bo_ref[...]

    # ----- residual + LN2 + FFN + residual (dropouts = identity) -----
    x = x + attn
    tgt2 = _layernorm(x, ln2_ref[...], eps)
    hdn = jnp.dot(tgt2, wf1_ref[...], preferred_element_type=jnp.float32) + bf1_ref[...]
    hdn = _tanh_gelu(hdn)
    ffn = jnp.dot(hdn, wf2_ref[...], preferred_element_type=jnp.float32) + bf2_ref[...]
    o_ref[0] = (x + ffn).astype(o_ref.dtype)


def pallas_transformer_layer(lp, tgt, type_embed, add_mask):
    """tgt: (BC, T, D); type_embed: (1, T, D); add_mask: (BC, 1, T)."""
    B, T, D = tgt.shape
    kernel = functools.partial(
        _fused_layer_kernel, nhead=NHEAD, head_dim=HEAD_DIM,
        scale=1.0 / math.sqrt(HEAD_DIM), eps=LN_EPS)
    return pl.pallas_call(
        kernel,
        out_shape=jax.ShapeDtypeStruct((B, T, D), jnp.float32),
        grid=(B,),
        in_specs=[
            pl.BlockSpec((1, T, D), lambda i: (i, 0, 0)),      # tgt
            pl.BlockSpec((1, T, D), lambda i: (0, 0, 0)),      # type_embed (shared)
            pl.BlockSpec((1, 1, T), lambda i: (i, 0, 0)),      # additive mask
            pl.BlockSpec((2, D), lambda i: (0, 0)),            # ln1 [g;b]
            pl.BlockSpec((D, 2 * D), lambda i: (0, 0)),        # Wq|Wk fused
            pl.BlockSpec((1, 2 * D), lambda i: (0, 0)),        # bq|bk
            pl.BlockSpec((D, D), lambda i: (0, 0)),            # Wv
            pl.BlockSpec((1, D), lambda i: (0, 0)),            # bv
            pl.BlockSpec((D, D), lambda i: (0, 0)),            # Wo
            pl.BlockSpec((1, D), lambda i: (0, 0)),            # bo
            pl.BlockSpec((2, D), lambda i: (0, 0)),            # ln2 [g;b]
            pl.BlockSpec((D, D_FFN), lambda i: (0, 0)),        # Wf1
            pl.BlockSpec((1, D_FFN), lambda i: (0, 0)),        # bf1
            pl.BlockSpec((D_FFN, D), lambda i: (0, 0)),        # Wf2
            pl.BlockSpec((1, D), lambda i: (0, 0)),            # bf2
        ],
        out_specs=pl.BlockSpec((1, T, D), lambda i: (i, 0, 0)),
        compiler_params=pltpu.CompilerParams(dimension_semantics=("parallel",)),
    )(tgt, type_embed, add_mask,
      lp["ln1"], lp["Wqk"], lp["bqk"], lp["Wv"], lp["bv"], lp["Wo"], lp["bo"],
      lp["ln2"], lp["Wf1"], lp["bf1"], lp["Wf2"], lp["bf2"])


# ---------------------------- parameter setup -----------------------------------
def init_params(key):
    p = {}

    def nrm(k, shape):
        return INIT_STD * jax.random.normal(k, shape, jnp.float32)

    keys = iter(jax.random.split(key, 64))
    # encoder substitute (TextEncoder)
    p["tok_emb"] = nrm(next(keys), (VOCAB, SENT_DIM))
    # FullTransformer
    p["type_embed"] = nrm(next(keys), (2, D_MODEL))
    p["sent_W"] = nrm(next(keys), (SENT_DIM, D_MODEL))
    p["sent_b"] = jnp.zeros((1, D_MODEL), jnp.float32)
    # edge_encoder = MLP(EDGE_FEAT, d, d, 1, layer_norm=True):
    #   Linear -> Dropout -> LayerNorm -> GELU -> Linear
    p["edge_W0"] = nrm(next(keys), (EDGE_FEAT, D_MODEL))
    p["edge_b0"] = jnp.zeros((1, D_MODEL), jnp.float32)
    p["edge_ln"] = jnp.stack([jnp.ones((D_MODEL,), jnp.float32),
                              jnp.zeros((D_MODEL,), jnp.float32)])
    p["edge_W1"] = nrm(next(keys), (D_MODEL, D_MODEL))
    p["edge_b1"] = jnp.zeros((1, D_MODEL), jnp.float32)
    # transformer layers (Q|K weights packed, V separate because its input differs)
    p["layers"] = []
    for _ in range(N_LAYERS):
        lk = iter(jax.random.split(next(keys), 16))
        layer = {
            "ln1": jnp.stack([jnp.ones((D_MODEL,), jnp.float32),
                              jnp.zeros((D_MODEL,), jnp.float32)]),
            "Wqk": nrm(next(lk), (D_MODEL, 2 * D_MODEL)),
            "bqk": jnp.zeros((1, 2 * D_MODEL), jnp.float32),
            "Wv": nrm(next(lk), (D_MODEL, D_MODEL)),
            "bv": jnp.zeros((1, D_MODEL), jnp.float32),
            "Wo": nrm(next(lk), (D_MODEL, D_MODEL)),
            "bo": jnp.zeros((1, D_MODEL), jnp.float32),
            "ln2": jnp.stack([jnp.ones((D_MODEL,), jnp.float32),
                              jnp.zeros((D_MODEL,), jnp.float32)]),
            "Wf1": nrm(next(lk), (D_MODEL, D_FFN)),
            "bf1": jnp.zeros((1, D_FFN), jnp.float32),
            "Wf2": nrm(next(lk), (D_FFN, D_MODEL)),
            "bf2": jnp.zeros((1, D_MODEL), jnp.float32),
        }
        p["layers"].append(layer)
    # qa_scorer = MLP(d, d, 1, 1, layer_norm=True)
    p["qa_W0"] = nrm(next(keys), (D_MODEL, D_MODEL))
    p["qa_b0"] = jnp.zeros((1, D_MODEL), jnp.float32)
    p["qa_ln"] = jnp.stack([jnp.ones((D_MODEL,), jnp.float32),
                            jnp.zeros((D_MODEL,), jnp.float32)])
    p["qa_w1"] = nrm(next(keys), (1, D_MODEL))       # final D -> 1 projection (row vector)
    p["qa_b1"] = jnp.zeros((1, 1), jnp.float32)
    return p


# ---------------------------- model (glue + kernel calls) -----------------------
def make_one_hot(idx, num_classes):
    return jax.nn.one_hot(idx, num_classes, dtype=jnp.float32)


def batch_graph(edge_index_list, edge_type_list, n_nodes):
    ei = [edge_index_list[i] + i * n_nodes for i in range(len(edge_index_list))]
    edge_index = jnp.concatenate(ei, axis=1)
    edge_type = jnp.concatenate(edge_type_list, axis=0)
    return edge_index, edge_type


def lm_qat_forward(params, lm_input_ids, lm_attention_mask, node_type_ids,
                   edge_index_list, edge_type_list):
    bs, nc = lm_input_ids.shape[0], lm_input_ids.shape[1]
    # ----- flatten (bs, nc, ...) -> (bs*nc, ...) like _inputs1/_inputs2 -----
    ids_flat = lm_input_ids.reshape(BC, SEQ_LM)
    attn_flat = lm_attention_mask.reshape(BC, SEQ_LM)
    ntype_flat = node_type_ids.reshape(BC, N_NODES)

    # ----- TextEncoder substitute -----
    lm_all_states = params["tok_emb"][ids_flat]              # (BC, SEQ_LM, SENT_DIM)

    # ----- batch_graph -----
    edge_index, edge_type = batch_graph(edge_index_list, edge_type_list, N_NODES)

    # ----- get_graph_edge_embedding (fused edge_encoder) -----
    edge_vec = make_one_hot(edge_type, N_ETYPE)
    node_type = ntype_flat.reshape(-1)
    head_vec = make_one_hot(node_type[edge_index[0]], N_NTYPE)
    tail_vec = make_one_hot(node_type[edge_index[1]], N_NTYPE)
    edge_feat = jnp.concatenate([edge_vec, head_vec, tail_vec], axis=1)   # (E_tot, 16)
    edge_embeddings = pallas_mlp_ln(edge_feat, params["edge_W0"], params["edge_b0"],
                                    params["edge_ln"], params["edge_W1"],
                                    params["edge_b1"])                    # (E_tot, D)

    # ----- construct_token (pad ragged per-graph edges) -----
    tokens, masks, start = [], [], 0
    for length in EDGE_COUNTS:
        emb = edge_embeddings[start:start + length]
        emb = jnp.pad(emb, ((0, MAX_E - length), (0, 0)))
        tokens.append(emb)
        masks.append(jnp.arange(MAX_E) >= length)
        start += length
    graph_tokens = jnp.stack(tokens)                          # (BC, MAX_E, D)
    graph_mask = jnp.stack(masks)                             # (BC, MAX_E) True = pad

    # ----- LM tokens + concat -----
    lm_tokens = pallas_linear(lm_all_states.reshape(-1, SENT_DIM),
                              params["sent_W"], params["sent_b"]).reshape(BC, SEQ_LM, D_MODEL)
    lm_mask = jnp.logical_not(attn_flat.astype(bool))         # True = pad
    tgt = jnp.concatenate([lm_tokens, graph_tokens], axis=1)  # (BC, T, D)
    tgt_mask = jnp.concatenate([lm_mask, graph_mask], axis=1) # (BC, T)
    add_mask = jnp.where(tgt_mask, NEG_INF, 0.0).astype(jnp.float32)[:, None, :]  # (BC,1,T)

    # ----- type embeddings -----
    type_embed = jnp.concatenate(
        [jnp.tile(params["type_embed"][0][None, :], (SEQ_LM, 1)),
         jnp.tile(params["type_embed"][1][None, :], (MAX_E, 1))], axis=0)[None]  # (1, T, D)

    # ----- transformer layers: one fused pallas_call per layer -----
    for lp in params["layers"]:
        tgt = pallas_transformer_layer(lp, tgt, type_embed, add_mask)

    # ----- qa_scorer on first token (fused kernel, D->1 as lane reduction) -----
    graph_score = pallas_qa_scorer(tgt[:, 0, :], params["qa_W0"], params["qa_b0"],
                                   params["qa_ln"], params["qa_w1"], params["qa_b1"])
    logits = graph_score.reshape(bs, nc)
    rpe = jnp.zeros((NHEAD, T_TOTAL, T_TOTAL), jnp.float32)   # TODO(synk): rel-pos bias placeholder
    return logits, rpe


# ---------------------------------- main -----------------------------------------
if __name__ == "__main__":
    key = jax.random.PRNGKey(0)
    pkey, k1, k2, k3 = jax.random.split(key, 4)
    params = init_params(pkey)

    lm_input_ids = jax.random.randint(k1, (BS, NC, SEQ_LM), 0, VOCAB)
    lm_attention_mask = jnp.ones((BS, NC, SEQ_LM), jnp.int32)
    lm_attention_mask = lm_attention_mask.at[1, :, -2:].set(0)      # some padded LM tokens
    node_type_ids = jax.random.randint(k2, (BS, NC, N_NODES), 0, N_NTYPE)

    # deterministic ragged edge lists (one per bs*nc graph)
    edge_index_list, edge_type_list = [], []
    for g, cnt in enumerate(EDGE_COUNTS):
        heads = (jnp.arange(cnt) + g) % N_NODES
        tails = (jnp.arange(cnt) * 3 + 1 + g) % N_NODES
        edge_index_list.append(jnp.stack([heads, tails], axis=0).astype(jnp.int32))
        edge_type_list.append(((jnp.arange(cnt) + 2 * g) % N_ETYPE).astype(jnp.int32))

    logits, rpe = lm_qat_forward(params, lm_input_ids, lm_attention_mask,
                                 node_type_ids, edge_index_list, edge_type_list)
    jax.block_until_ready(logits)
    jax.block_until_ready(rpe)
    assert logits.shape == (BS, NC)
    print("KERNEL_OK")
</pallas_src>

<mosaic_0001>
module attributes {stable_mosaic.version = 11 : i64} {
  func.func @_mlp_ln_kernel(%arg0: i32, %arg1: memref<27x16xf32, #tpu.memory_space<vmem>>, %arg2: memref<16x128xf32, #tpu.memory_space<vmem>>, %arg3: memref<1x128xf32, #tpu.memory_space<vmem>>, %arg4: memref<2x128xf32, #tpu.memory_space<vmem>>, %arg5: memref<128x128xf32, #tpu.memory_space<vmem>>, %arg6: memref<1x128xf32, #tpu.memory_space<vmem>>, %arg7: memref<27x128xf32, #tpu.memory_space<vmem>>) attributes {dimension_semantics = [#tpu.dimension_semantics<arbitrary>], iteration_bounds = array<i64: 1>, scalar_prefetch = 0 : i64, scratch_operands = 0 : i64, tpu.core_type = #tpu.core_type<tc>, window_params = [{pipeline_mode = #tpu.pipeline_mode<synchronous>, transform_indices = @transform_0, window_bounds = array<i64: 27, 16>}, {pipeline_mode = #tpu.pipeline_mode<synchronous>, transform_indices = @transform_1, window_bounds = array<i64: 16, 128>}, {pipeline_mode = #tpu.pipeline_mode<synchronous>, transform_indices = @transform_2, window_bounds = array<i64: 1, 128>}, {pipeline_mode = #tpu.pipeline_mode<synchronous>, transform_indices = @transform_3, window_bounds = array<i64: 2, 128>}, {pipeline_mode = #tpu.pipeline_mode<synchronous>, transform_indices = @transform_4, window_bounds = array<i64: 128, 128>}, {pipeline_mode = #tpu.pipeline_mode<synchronous>, transform_indices = @transform_5, window_bounds = array<i64: 1, 128>}, {pipeline_mode = #tpu.pipeline_mode<synchronous>, transform_indices = @transform_6, window_bounds = array<i64: 27, 128>}]} {
    %c0 = arith.constant 0 : index
    %c0_0 = arith.constant 0 : index
    %0 = vector.load %arg1[%c0, %c0_0] : memref<27x16xf32, #tpu.memory_space<vmem>>, vector<27x16xf32>
    %c0_1 = arith.constant 0 : index
    %c0_2 = arith.constant 0 : index
    %1 = vector.load %arg2[%c0_1, %c0_2] : memref<16x128xf32, #tpu.memory_space<vmem>>, vector<16x128xf32>
    %cst = arith.constant dense<0.000000e+00> : vector<27x128xf32>
    %2 = tpu.matmul %0, %1, %cst {dimension_numbers = #tpu.dot_dimension_numbers<[1], [0], [0], [1], [0, 0, 1, 1], [], []>} : vector<27x16xf32>, vector<16x128xf32>, vector<27x128xf32> -> vector<27x128xf32>
    %c0_3 = arith.constant 0 : index
    %c0_4 = arith.constant 0 : index
    %3 = vector.load %arg3[%c0_3, %c0_4] : memref<1x128xf32, #tpu.memory_space<vmem>>, vector<1x128xf32>
    %4 = vector.broadcast %3 : vector<1x128xf32> to vector<27x128xf32>
    %5 = arith.addf %2, %4 : vector<27x128xf32>
    %c0_5 = arith.constant 0 : index
    %c0_6 = arith.constant 0 : index
    %6 = vector.load %arg4[%c0_5, %c0_6] : memref<2x128xf32, #tpu.memory_space<vmem>>, vector<2x128xf32>
    %7 = vector.extract_strided_slice %6 {offsets = [0, 0], sizes = [1, 128], strides = [1, 1]} : vector<2x128xf32> to vector<1x128xf32>
    %8 = vector.extract_strided_slice %6 {offsets = [1, 0], sizes = [1, 128], strides = [1, 1]} : vector<2x128xf32> to vector<1x128xf32>
    %cst_7 = arith.constant dense<0.000000e+00> : vector<27xf32>
    %9 = vector.multi_reduction <add>, %5, %cst_7 [1] : vector<27x128xf32> to vector<27xf32>
    %10 = vector.shape_cast %9 : vector<27xf32> to vector<27x1xf32>
    %cst_8 = arith.constant 1.280000e+02 : f32
    %11 = vector.broadcast %cst_8 : f32 to vector<27x1xf32>
    %12 = arith.divf %10, %11 : vector<27x1xf32>
    %13 = vector.broadcast %12 : vector<27x1xf32> to vector<27x128xf32>
    %14 = arith.subf %5, %13 : vector<27x128xf32>
    %15 = arith.mulf %14, %14 : vector<27x128xf32>
    %cst_9 = arith.constant dense<0.000000e+00> : vector<27xf32>
    %16 = vector.multi_reduction <add>, %15, %cst_9 [1] : vector<27x128xf32> to vector<27xf32>
    %17 = vector.shape_cast %16 : vector<27xf32> to vector<27x1xf32>
    %cst_10 = arith.constant 1.280000e+02 : f32
    %18 = vector.broadcast %cst_10 : f32 to vector<27x1xf32>
    %19 = arith.divf %17, %18 : vector<27x1xf32>
    %cst_11 = arith.constant 9.99999974E-6 : f32
    %20 = vector.broadcast %cst_11 : f32 to vector<27x1xf32>
    %21 = arith.addf %19, %20 : vector<27x1xf32>
    %22 = math.rsqrt %21 : vector<27x1xf32>
    %23 = vector.broadcast %22 : vector<27x1xf32> to vector<27x128xf32>
    %24 = arith.mulf %14, %23 : vector<27x128xf32>
    %25 = vector.broadcast %7 : vector<1x128xf32> to vector<27x128xf32>
    %26 = arith.mulf %24, %25 : vector<27x128xf32>
    %27 = vector.broadcast %8 : vector<1x128xf32> to vector<27x128xf32>
    %28 = arith.addf %26, %27 : vector<27x128xf32>
    %cst_12 = arith.constant 5.000000e-01 : f32
    %29 = vector.broadcast %cst_12 : f32 to vector<27x128xf32>
    %30 = arith.mulf %29, %28 : vector<27x128xf32>
    %cst_13 = arith.constant 4.471500e-02 : f32
    %31 = vector.broadcast %cst_13 : f32 to vector<27x128xf32>
    %32 = arith.mulf %31, %28 : vector<27x128xf32>
    %33 = arith.mulf %32, %28 : vector<27x128xf32>
    %34 = arith.mulf %33, %28 : vector<27x128xf32>
    %35 = arith.addf %28, %34 : vector<27x128xf32>
    %cst_14 = arith.constant 0.797884583 : f32
    %36 = vector.broadcast %cst_14 : f32 to vector<27x128xf32>
    %37 = arith.mulf %36, %35 : vector<27x128xf32>
    %38 = math.tanh %37 : vector<27x128xf32>
    %cst_15 = arith.constant 1.000000e+00 : f32
    %39 = vector.broadcast %cst_15 : f32 to vector<27x128xf32>
    %40 = arith.addf %39, %38 : vector<27x128xf32>
    %41 = arith.mulf %30, %40 : vector<27x128xf32>
    %c0_16 = arith.constant 0 : index
    %c0_17 = arith.constant 0 : index
    %42 = vector.load %arg5[%c0_16, %c0_17] : memref<128x128xf32, #tpu.memory_space<vmem>>, vector<128x128xf32>
    %cst_18 = arith.constant dense<0.000000e+00> : vector<27x128xf32>
    %43 = tpu.matmul %41, %42, %cst_18 {dimension_numbers = #tpu.dot_dimension_numbers<[1], [0], [0], [1], [0, 0, 1, 1], [], []>} : vector<27x128xf32>, vector<128x128xf32>, vector<27x128xf32> -> vector<27x128xf32>
    %c0_19 = arith.constant 0 : index
    %c0_20 = arith.constant 0 : index
    %44 = vector.load %arg6[%c0_19, %c0_20] : memref<1x128xf32, #tpu.memory_space<vmem>>, vector<1x128xf32>
    %45 = vector.broadcast %44 : vector<1x128xf32> to vector<27x128xf32>
    %46 = arith.addf %43, %45 : vector<27x128xf32>
    %c0_21 = arith.constant 0 : index
    %c0_22 = arith.constant 0 : index
    %47 = vector.load %arg7[%c0_21, %c0_22] : memref<27x128xf32, #tpu.memory_space<vmem>>, vector<27x128xf32>
    tpu.vector_store %arg7[%c0_21, %c0_22], %46 {strides = array<i32>} : memref<27x128xf32, #tpu.memory_space<vmem>>, vector<27x128xf32>,
    return
  }
  func.func @transform_0(%arg0: i32) -> (i32, i32) {
    %c0_i32 = arith.constant 0 : i32
    %c0_i32_0 = arith.constant 0 : i32
    %c0_i32_1 = arith.constant 0 : i32
    return %c0_i32, %c0_i32_0 : i32, i32
  }
  func.func @transform_1(%arg0: i32) -> (i32, i32) {
    %c0_i32 = arith.constant 0 : i32
    %c0_i32_0 = arith.constant 0 : i32
    %c0_i32_1 = arith.constant 0 : i32
    return %c0_i32, %c0_i32_0 : i32, i32
  }
  func.func @transform_2(%arg0: i32) -> (i32, i32) {
    %c0_i32 = arith.constant 0 : i32
    %c0_i32_0 = arith.constant 0 : i32
    %c0_i32_1 = arith.constant 0 : i32
    return %c0_i32, %c0_i32_0 : i32, i32
  }
  func.func @transform_3(%arg0: i32) -> (i32, i32) {
    %c0_i32 = arith.constant 0 : i32
    %c0_i32_0 = arith.constant 0 : i32
    %c0_i32_1 = arith.constant 0 : i32
    return %c0_i32, %c0_i32_0 : i32, i32
  }
  func.func @transform_4(%arg0: i32) -> (i32, i32) {
    %c0_i32 = arith.constant 0 : i32
    %c0_i32_0 = arith.constant 0 : i32
    %c0_i32_1 = arith.constant 0 : i32
    return %c0_i32, %c0_i32_0 : i32, i32
  }
  func.func @transform_5(%arg0: i32) -> (i32, i32) {
    %c0_i32 = arith.constant 0 : i32
    %c0_i32_0 = arith.constant 0 : i32
    %c0_i32_1 = arith.constant 0 : i32
    return %c0_i32, %c0_i32_0 : i32, i32
  }
  func.func @transform_6(%arg0: i32) -> (i32, i32) {
    %c0_i32 = arith.constant 0 : i32
    %c0_i32_0 = arith.constant 0 : i32
    %c0_i32_1 = arith.constant 0 : i32
    return %c0_i32, %c0_i32_0 : i32, i32
  }
}

</mosaic_0001>

<bundles_post_ra>
// kernel: tpu_custom_call.1
= control target key start
LH: loop header
LB: loop body
LE: loop exit
PB: predicated region body
PF: predicated region fallthrough
CT: control target
= control target key end

     0   :  { %11 = vsyncpa [#allocation3], 0  ;;  %s681_s0 = inlined_call_operand.vmem [shape: f32[27,16], index: 0, kind: input, shape index: {}]   ;;  %s682_s1 = inlined_call_operand.vmem [shape: f32[16,128], index: 1, kind: input, shape index: {}]   ;;  %s683_s2 = inlined_call_operand.vmem [shape: f32[1,128], index: 2, kind: input, shape index: {}]   ;;  %s684_s3 = inlined_call_operand.vmem [shape: f32[2,128], index: 3, kind: input, shape index: {}]   ;;  %s685_s4 = inlined_call_operand.hbm [shape: f32[128,128], index: 4, kind: input, shape index: {}]   ;;  %s686_s5 = inlined_call_operand.vmem [shape: f32[1,128], index: 5, kind: input, shape index: {}]   ;;  %s687_s6 = inlined_call_operand.hbm [shape: f32[27,128], index: 6, kind: output, shape index: {}]  }
   0x1   :  { %12 = vsyncpa [#allocation4], 0  ;;  %s563_s21 = smov [#allocation2]   ;;  %s515_s25 = scalar_lea.hbm %s685_s4, 2048 }
   0x2   :  { %s26_s22 = sshll.u32 %s563_s21, 4  ;;  %p516_p0 = scmp.ne.s32.totalorder %s685_s4, %s515_s25  ;;  %s27_s22 = int_to_ptr.vmem [resolvable:$true] %s26_s22 }
   0x3   :  { %p519_p1 = scmp.lt.u32.totalorder %s515_s25, %s685_s4 }
   0x5   :  { %p521_p2 = pnand %p519_p1, %p516_p0 }
   0x7   :  { %524 = shalt.err (!%p521_p2)
}
   0x8   :  { %s525_s30 = scalar_lea.vmem %s27_s22, 2048  ;;  %p530_p4 = scmp.lt.s32.totalorder %s27_s22, %s27_s22 }
   0x9   :  { %p526_p3 = scmp.ne.s32.totalorder %s27_s22, %s525_s30  ;;  %p531_p5 = scmp.lt.s32.totalorder %s525_s30, %s525_s30 }
   0xb   :  { %p532_p6 = por %p531_p5, %p530_p4 }
   0xd   :  { %p533_p7 = pnand %p532_p6, %p526_p3 }
   0xf   :  { %536 = shalt.err (!%p533_p7)
}
  0x10   :  { %s564_s7 = smov 128   ;;  %s565_s8 = smov 8  }
  0x11   :  { %32 = dma.hbm_to_vmem [thread:$0]  %s685_s4, 2048, %s27_s22, [#allocation3], %s564_s7, %s564_s7, %s565_s8  }
  0x12   :  { %559 = dma.done.wait [#allocation3], 2048  }
  0x13   :  { %560 = vsyncadd [#allocation3], 4294965248  ;;  %vm51_vm0 = vcmask 130048   ;;  %v42_v0 = vld [vmem:[%s682_s1] sm:$0xff]  ;;  %v43_v1 = vld [vmem:[%s682_s1 + $0x8] sm:$0xff]  ;;  %vm156_vm1 = vcmask 1042432   ;;  %v198_v60 = vlaneseq }
  0x14   :  { %v38_v2 = vld [vmem:[%s681_s0] sm:$0xff]  ;;  %v459_v3 = vpack.c.bf16 %v43_v1, %v42_v0  ;;  %v39_v4 = vld [vmem:[%s681_s0 + $0x8] sm:$0xff]  ;;  %v40_v5 = vld [vmem:[%s681_s0 + $0x10] sm:$0xff]  ;;  %s566_s24 = smov [#allocation5]  }
  0x15   :  { %415 = vmatprep.mubr.msk.f32.mxu0 %vm51_vm0, %v38_v2  ;;  %v41_v6 = vld [vmem:[%s681_s0 + $0x18] sm:$0x7]  ;;  %v379_v7 = vld [vmem:[%s683_s2] ss:$0 sm:$0xff]  ;;  %v251_v35 = vld [vmem:[#allocation2 + $0x8] sm:$0xff]  ;;  %v199_v2 = vshrl.u32 %v198_v60, 7 }
  0x16   :  { %460 = vmatprep.subr.bf16.mxu0 %v459_v3  ;;  %v250_v34 = vld [vmem:[#allocation2] sm:$0xff]  ;;  %v252_v37 = vld [vmem:[#allocation2 + $0x10] sm:$0xff]  ;;  %v253_v38 = vld [vmem:[#allocation2 + $0x18] sm:$0xff]  ;;  %s367_s25 = sshll.u32 %s566_s24, 4  ;;  %s368_s25 = int_to_ptr.vmem [resolvable:$true] %s367_s25 }
  0x17   :  { %462 = vmatpush3.bf16.msra.mxu0 %v459_v3  ;;  %v463_v36 = vpack.c.bf16 %v251_v35, %v250_v34  ;;  %v467_v39 = vpack.c.bf16 %v253_v38, %v252_v37  ;;  %v254_v40 = vld [vmem:[#allocation2 + $0x20] sm:$0xff]  ;;  %v255_v41 = vld [vmem:[#allocation2 + $0x28] sm:$0xff]  ;;  %v256_v43 = vld [vmem:[#allocation2 + $0x30] sm:$0xff]  ;;  %s537_s26 = scalar_lea.vmem %s368_s25, 512  ;;  %p542_p9 = scmp.lt.s32.totalorder %s368_s25, %s368_s25 }
  0x18   :  { %v471_v42 = vpack.c.bf16 %v255_v41, %v254_v40  ;;  %v257_v44 = vld [vmem:[#allocation2 + $0x38] sm:$0xff]  ;;  %v258_v45 = vld [vmem:[#allocation2 + $0x40] sm:$0xff]  ;;  %v259_v47 = vld [vmem:[#allocation2 + $0x48] sm:$0xff]  ;;  %p538_p8 = scmp.ne.s32.totalorder %s368_s25, %s537_s26  ;;  %p543_p10 = scmp.lt.s32.totalorder %s537_s26, %s537_s26 }
  0x19   :  { %464 = vmatprep.subr.bf16.mxu1 %v463_v36  ;;  %v475_v46 = vpack.c.bf16 %v257_v44, %v256_v43  ;;  %v479_v48 = vpack.c.bf16 %v259_v47, %v258_v45  ;;  %v260_v49 = vld [vmem:[#allocation2 + $0x50] sm:$0xff]  ;;  %v261_v50 = vld [vmem:[#allocation2 + $0x58] sm:$0xff]  ;;  %v262_v52 = vld [vmem:[#allocation2 + $0x60] sm:$0xff] }
  0x1a   :  { %416 = vmatmul.mubr.msk.f32.vlgmr.msra.gmra.mrb[0].mxu0 %vm51_vm0, %v39_v4  ;;  %466 = vmatpush3.bf16.msra.mxu1 %v463_v36  ;;  %v483_v51 = vpack.c.bf16 %v261_v50, %v260_v49  ;;  %v263_v53 = vld [vmem:[#allocation2 + $0x68] sm:$0xff]  ;;  %v264_v55 = vld [vmem:[#allocation2 + $0x70] sm:$0xff]  ;;  %v265_v56 = vld [vmem:[#allocation2 + $0x78] sm:$0xff]  ;;  %p544_p11 = por %p543_p10, %p542_p9 }
  0x1b   :  { %418 = vmatprep.mubr.msk.f32.mxu0 %vm51_vm0, %v40_v5  ;;  %468 = vmatprep.subr.bf16.mxu1 %v467_v39  ;;  %v487_v54 = vpack.c.bf16 %v263_v53, %v262_v52  ;;  %v491_v57 = vpack.c.bf16 %v265_v56, %v264_v55 }
  0x1c   :  { %p545_p12 = pnand %p544_p11, %p538_p8 }
  0x1e   :  { %419 = vmatmul.mubr.msk.f32.gmra.mrb[2].mxu0 %vm51_vm0, %v41_v6  ;;  %470 = vmatpush3.bf16.msra.mxu1 %v467_v39  ;;  %v200_v6 = vsub.s32 0, %v199_v2 }
  0x1f   :  { %472 = vmatprep.subr.bf16.mxu1 %v471_v42 }
  0x22   :  { %474 = vmatpush3.bf16.msra.mxu1 %v471_v42 }
  0x23   :  { %476 = vmatprep.subr.bf16.mxu1 %v475_v46 }
  0x26   :  { %478 = vmatpush3.bf16.msra.mxu1 %v475_v46 }
  0x27   :  { %480 = vmatprep.subr.bf16.mxu1 %v479_v48 }
  0x2a   :  { %482 = vmatpush3.bf16.msra.mxu1 %v479_v48 }
  0x2b   :  { %484 = vmatprep.subr.bf16.mxu1 %v483_v51 }
  0x2e   :  { %486 = vmatpush3.bf16.msra.mxu1 %v483_v51 }
  0x2f   :  { %488 = vmatprep.subr.bf16.mxu1 %v487_v54 }
  0x32   :  { %490 = vmatpush3.bf16.msra.mxu1 %v487_v54 }
  0x33   :  { %492 = vmatprep.subr.bf16.mxu1 %v491_v57 }
  0x36   :  { %494 = vmatpush3.bf16.msra.mxu1 %v491_v57 }
  0xed   :  { %v417_v8 = vpop.f32.mrb[0].mxu0 }
  0xee   :  { %v130_v9 = vpop.f32.mrb[1].mxu0  ;;  %v136_v13 = vadd.f32 %v417_v8, %v379_v7  ;;  %v149_v8 = vld [vmem:[%s684_s3] sm:$0x3] }
  0xef   :  { %v131_v10 = vadd.f32 %v379_v7, %v130_v9  ;;  %v208_v9 = vsub.s32 1, %v199_v2 }
  0xf1   :  { %v420_v11 = vpop.f32.mrb[2].mxu0  ;;  %150 = vadd.xlane.f32.xlu0 %v131_v10 }
  0xf2   :  { %v140_v12 = vpop.f32.mrb[3].mxu0  ;;  %v146_v15 = vadd.f32 %v420_v11, %v379_v7  ;;  %v201_v11 = vrot.slane %v149_v8, %v200_v6 }
  0xf3   :  { %v141_v14 = vadd.f32 %v379_v7, %v140_v12 }
  0xf4   :  { %v157_v16 = vsel %vm156_vm1, %v146_v15, 0.0 }
  0xf5   :  { %154 = vadd.xlane.f32.xlu1 %v141_v14  ;;  %152 = vadd.xlane.f32.xlu0 %v136_v13 }
  0xf9   :  { %158 = vadd.xlane.f32.xlu1 %v157_v16 }
 0x17e   :  { %v151_v17 = vpop.xlane.xlu0 %150 }
 0x17f   :  { %v161_v18 = vmul.f32 0.0078125, %v151_v17 }
 0x181   :  { %v639_v19 = vsub.f32 %v131_v10, %v161_v18 }
 0x182   :  { %v155_v20 = vpop.xlane.xlu1 %154  ;;  %v153_v21 = vpop.xlane.xlu0 %152 }
 0x183   :  { %v163_v22 = vmul.f32 0.0078125, %v155_v20  ;;  %v162_v23 = vmul.f32 0.0078125, %v153_v21  ;;  %v169_v24 = vmul.f32 %v639_v19, %v639_v19 }
 0x185   :  { %v643_v25 = vsub.f32 %v141_v14, %v163_v22  ;;  %v645_v26 = vsub.f32 %v136_v13, %v162_v23  ;;  %173 = vadd.xlane.f32.xlu0 %v169_v24  ;;  %v209_v14 = vrot.slane %v149_v8, %v208_v9 }
 0x186   :  { %v159_v27 = vpop.xlane.xlu1 %158 }
 0x187   :  { %v164_v28 = vmul.f32 0.0078125, %v159_v27  ;;  %v171_v29 = vmul.f32 %v643_v25, %v643_v25  ;;  %v170_v30 = vmul.f32 %v645_v26, %v645_v26 }
 0x189   :  { %v651_v31 = vsub.f32 %v146_v15, %v164_v28  ;;  %177 = vadd.xlane.f32.xlu0 %v171_v29  ;;  %175 = vadd.xlane.f32.xlu1 %v170_v30 }
 0x18b   :  { %v172_v32 = vmul.f32 %v651_v31, %v651_v31 }
 0x18d   :  { %v179_v33 = vsel %vm156_vm1, %v172_v32, 0.0 }
 0x18e   :  { %180 = vadd.xlane.f32.xlu1 %v179_v33 }
 0x212   :  { %v174_v58 = vpop.xlane.xlu0 %173 }
 0x213   :  { %v182_v59 = vmul.f32 0.0078125, %v174_v58 }
 0x215   :  { %v186_v61 = vadd.f32 1e-05, %v182_v59 }
 0x216   :  { %v176_v62 = vpop.xlane.xlu1 %175  ;;  %v178_v63 = vpop.xlane.xlu0 %177 }
 0x217   :  { %499 = vrsqrt.f32 %v186_v61  ;;  %v183_v0 = vmul.f32 0.0078125, %v176_v62  ;;  %v184_v1 = vmul.f32 0.0078125, %v178_v63 }
 0x219   :  { %v187_v3 = vadd.f32 1e-05, %v183_v0  ;;  %v188_v4 = vadd.f32 1e-05, %v184_v1  ;;  %v384_v1 = vld [vmem:[%s686_s5] ss:$0 sm:$0xff] }
 0x21b   :  { %501 = vrsqrt.f32 %v187_v3  ;;  %v181_v5 = vpop.xlane.xlu1 %180 }
 0x21c   :  { %503 = vrsqrt.f32 %v188_v4  ;;  %v185_v7 = vmul.f32 0.0078125, %v181_v5 }
 0x21e   :  { %v189_v10 = vadd.f32 1e-05, %v185_v7 }
 0x220   :  { %505 = vrsqrt.f32 %v189_v10 }
 0x221   :  { %v500_v12 = vpop.eup %499 }
 0x222   :  { %v194_v13 = vmul.f32 %v500_v12, %v639_v19 }
 0x224   :  { %v202_v15 = vmul.f32 %v201_v11, %v194_v13 }
 0x225   :  { %v502_v16 = vpop.eup %501 }
 0x226   :  { %v504_v17 = vpop.eup %503  ;;  %v195_v18 = vmul.f32 %v502_v16, %v645_v26  ;;  %v210_v20 = vadd.f32 %v209_v14, %v202_v15 }
 0x227   :  { %v196_v21 = vmul.f32 %v504_v17, %v643_v25 }
 0x228   :  { %v203_v22 = vmul.f32 %v201_v11, %v195_v18  ;;  %v218_v23 = vmul.f32 0.044715, %v210_v20  ;;  %v214_v50 = vmul.f32 0.5, %v210_v20 }
 0x229   :  { %v204_v24 = vmul.f32 %v201_v11, %v196_v21 }
 0x22a   :  { %v506_v27 = vpop.eup %505  ;;  %v211_v28 = vadd.f32 %v209_v14, %v203_v22  ;;  %v222_v29 = vmul.f32 %v218_v23, %v210_v20 }
 0x22b   :  { %v212_v30 = vadd.f32 %v209_v14, %v204_v24  ;;  %v197_v32 = vmul.f32 %v506_v27, %v651_v31 }
 0x22c   :  { %v226_v33 = vmul.f32 %v222_v29, %v210_v20  ;;  %v219_v19 = vmul.f32 0.044715, %v211_v28  ;;  %v215_v55 = vmul.f32 0.5, %v211_v28 }
 0x22d   :  { %v205_v34 = vmul.f32 %v201_v11, %v197_v32  ;;  %v220_v35 = vmul.f32 0.044715, %v212_v30  ;;  %v216_v57 = vmul.f32 0.5, %v212_v30 }
 0x22e   :  { %v230_v36 = vadd.f32 %v226_v33, %v210_v20  ;;  %v223_v37 = vmul.f32 %v219_v19, %v211_v28 }
 0x22f   :  { %v213_v38 = vadd.f32 %v209_v14, %v205_v34  ;;  %v224_v26 = vmul.f32 %v220_v35, %v212_v30 }
 0x230   :  { %v234_v39 = vmul.f32 0.7978846, %v230_v36  ;;  %v227_v40 = vmul.f32 %v223_v37, %v211_v28 }
 0x231   :  { %v228_v25 = vmul.f32 %v224_v26, %v212_v30  ;;  %v221_v41 = vmul.f32 0.044715, %v213_v38  ;;  %v217_v62 = vmul.f32 0.5, %v213_v38 }
 0x232   :  { %507 = vtanh.f32 %v234_v39  ;;  %v231_v42 = vadd.f32 %v227_v40, %v211_v28 }
 0x233   :  { %v232_v43 = vadd.f32 %v228_v25, %v212_v30  ;;  %v225_v44 = vmul.f32 %v221_v41, %v213_v38 }
 0x234   :  { %v235_v45 = vmul.f32 0.7978846, %v231_v42 }
 0x235   :  { %v236_v46 = vmul.f32 0.7978846, %v232_v43  ;;  %v229_v47 = vmul.f32 %v225_v44, %v213_v38 }
 0x236   :  { %509 = vtanh.f32 %v235_v45 }
 0x237   :  { %511 = vtanh.f32 %v236_v46  ;;  %v233_v31 = vadd.f32 %v229_v47, %v213_v38 }
 0x239   :  { %v237_v48 = vmul.f32 0.7978846, %v233_v31 }
 0x23b   :  { %513 = vtanh.f32 %v237_v48 }
 0x23c   :  { %v508_v49 = vpop.eup %507 }
 0x23d   :  { %v242_v51 = vadd.f32 1.0, %v508_v49 }
 0x23f   :  { %v246_v52 = vmul.f32 %v242_v51, %v214_v50 }
 0x240   :  { %v510_v53 = vpop.eup %509 }
 0x241   :  { %v512_v54 = vpop.eup %511  ;;  %453 = vmatprep.mubr.f32.mxu1 %v246_v52  ;;  %v243_v56 = vadd.f32 1.0, %v510_v53 }
 0x242   :  { %v244_v58 = vadd.f32 1.0, %v512_v54 }
 0x243   :  { %v247_v59 = vmul.f32 %v243_v56, %v215_v55 }
 0x244   :  { %v248_v60 = vmul.f32 %v244_v58, %v216_v57 }
 0x245   :  { %v514_v61 = vpop.eup %513  ;;  %454 = vmatmul.mubr.f32.vlgmr.msra.gmra.mrb[0].mxu1 %v247_v59 }
 0x246   :  { %456 = vmatprep.mubr.f32.mxu1 %v248_v60  ;;  %v245_v63 = vadd.f32 1.0, %v514_v61 }
 0x248   :  { %v249_v0 = vmul.f32 %v245_v63, %v217_v62 }
 0x24a   :  { %457 = vmatmul.mubr.f32.gmra.mrb[2].mxu1 %v249_v0 }
 0x318   :  { %v455_v2 = vpop.f32.mrb[0].mxu1 }
 0x319   :  { %v345_v3 = vadd.f32 %v455_v2, %v384_v1  ;;  %v339_v4 = vpop.f32.mrb[1].mxu1 }
 0x31a   :  { %v340_v5 = vadd.f32 %v384_v1, %v339_v4 }
 0x31b   :  { %359 = vst [vmem:[#allocation5 + $0x8] sm:$0xff] %v345_v3 }
 0x31c   :  { %358 = vst [vmem:[#allocation5] sm:$0xff] %v340_v5 }
 0x31d   :  { %v458_v6 = vpop.f32.mrb[2].mxu1 }
 0x31e   :  { %v355_v7 = vadd.f32 %v458_v6, %v384_v1  ;;  %v349_v8 = vpop.f32.mrb[3].mxu1 }
 0x31f   :  { %v350_v9 = vadd.f32 %v384_v1, %v349_v8 }
 0x320   :  { %361 = vst [vmem:[#allocation5 + $0x18] sm:$0x7] %v355_v7 }
 0x321   :  { %360 = vst [vmem:[#allocation5 + $0x10] sm:$0xff] %v350_v9 }
 0x322   :  { %548 = shalt.err (!%p545_p12)
}
 0x323   :  { %s549_s28 = scalar_lea.hbm %s687_s6, 512 }
 0x324   :  { %p550_p13 = scmp.ne.s32.totalorder %s687_s6, %s549_s28  ;;  %p553_p0 = scmp.lt.u32.totalorder %s549_s28, %s687_s6 }
 0x326   :  { %p555_p1 = pnand %p553_p0, %p550_p13 }
 0x328   :  { %558 = shalt.err (!%p555_p1)
}
 0x329   :  { %373 = dma.vmem_to_hbm [thread:$0]  %s368_s25, 512, %s687_s6, [#allocation4], %s564_s7, %s564_s7, %s565_s8  }
 0x32a   :  { %561 = dma.done.wait [#allocation4], 512  }
 0x32b   :  { %562 = vsyncadd [#allocation4], 4294966784 }
 0x32c   :  { %377 = vsyncpa [#allocation3], 1 }
 0x32d   :  { %378 = vsyncpa [#allocation4], 1 }

</bundles_post_ra>
